<compile_context>
chip_gen: v7x
topology: tpu7x:2x2x1
jax: 0.10.0
libtpu: 0.0.40
codegen_flags: <defaults>
</compile_context>

<pallas_src>
import jax
import jax.numpy as jnp
from jax.experimental import pallas as pl
from jax.experimental.pallas import tpu as pltpu

NUM_FEA = 32
C_IN = (NUM_FEA * 2) * 2 * 2 * 2   # num_fea_4 * 2 = 512
C_HID1 = 512                       # conv1x1 out channels
C_HID2 = 128                       # fc1 out features
C_OUT = 1                          # fc2 out features
BN_EPS = 1e-5


def _round_up(x, m):
    return (x + m - 1) // m * m


def _pick_bm(n):
    """Batch-tile heuristic (see perf notes above)."""
    if n <= 128:
        return _round_up(n, 8)                 # single latency-bound step
    if n <= 1024:
        return _round_up(-(-n // 2), 128)      # >= 2 parallel steps (v7x: 2 TCs)
    return 512                                 # large N: 512-row MXU-aligned tiles


def relation_kernel(x_ref, w1_ref, b1_ref, w2_ref, b2_ref, w3_ref, b3_ref, o_ref):
    # Cast the f32 input tile to bf16 in VMEM/vregs (cheap VPU pack, fully
    # hidden) instead of a standalone XLA cast pass in the wrapper.
    x = x_ref[...].astype(jnp.bfloat16)                               # (bm, 512)

    # layer1: Conv2d(512, 512, k=1) over (N, C, 1, 1) == channel matmul.
    # Conv bias + eval-mode BatchNorm are pre-folded into w1/b1 (fold_params).
    h = jnp.dot(x, w1_ref[...], preferred_element_type=jnp.float32) + b1_ref[...]
    h = jnp.maximum(h, 0.0)                                           # ReLU (f32)

    # view(N, -1) is a no-op here (H = W = 1); fc1 + ReLU (bf16 MXU, f32 acc).
    h = jnp.dot(h.astype(jnp.bfloat16), w2_ref[...],
                preferred_element_type=jnp.float32) + b2_ref[...]
    h = jnp.maximum(h, 0.0)

    # dropout(p=0.5): eval mode -> identity.
    # fc2 (128 -> 1): VPU multiply + XLU row-reduce (avoids a 1-column MXU pass).
    logit = jnp.sum(h * w3_ref[...], axis=-1, keepdims=True) + b3_ref[...]

    # Direct (bm, 1) store; boundary-tile rows (if any) are masked by Pallas.
    o_ref[...] = jax.nn.sigmoid(logit)                                # (bm, 1) f32


def fold_params(params):
    """One-time weight prep: fold conv bias + eval-mode BN into the first
    matmul, transpose to (in, out) layout, cast matmul weights to bf16."""
    (w1, b1, bn_gamma, bn_beta, bn_mean, bn_var, w2, b2, w3, b3) = params
    bn_scale = bn_gamma / jnp.sqrt(bn_var + BN_EPS)
    bn_shift = bn_beta - bn_mean * bn_scale
    w1_t = (w1.reshape(C_HID1, C_IN).T * bn_scale[None, :]).astype(jnp.bfloat16)
    b1_f = (b1 * bn_scale + bn_shift).reshape(1, C_HID1).astype(jnp.float32)
    w2_t = w2.T.astype(jnp.bfloat16)                      # (512, 128)
    b2_r = b2.reshape(1, C_HID2).astype(jnp.float32)
    w3_r = w3.reshape(1, C_HID2).astype(jnp.float32)      # lane-dense fc2 row
    b3_r = b3.reshape(1, 1).astype(jnp.float32)
    return (w1_t, b1_f, w2_t, b2_r, w3_r, b3_r)


def relation_network_forward(x_nchw, folded_params, *, bm=None):
    N, C, H, W = x_nchw.shape
    assert (C, H, W) == (C_IN, 1, 1), "RelationNetwork expects (N, 512, 1, 1)"
    x = x_nchw.reshape(N, C)  # f32 (N, C); bf16 cast happens inside the kernel

    w1_t, b1_f, w2_t, b2_r, w3_r, b3_r = folded_params

    if bm is None:
        bm = _pick_bm(N)
    bm = _round_up(bm, 8)                       # guard: sublane-aligned tile
    grid = (pl.cdiv(N, bm),)                    # boundary tile masked by Pallas
    full = lambda i: (0, 0)                     # grid-invariant weight/bias blocks

    flops = 2 * N * C_IN * C_HID1 + 2 * N * C_HID1 * C_HID2 + 2 * N * C_HID2
    bytes_accessed = (N * C_IN * 4                          # x (f32)
                      + (C_IN * C_HID1 + C_HID1 * C_HID2) * 2   # bf16 weights
                      + (C_HID1 + C_HID2 + C_HID2 + 1) * 4      # biases + w3
                      + N * 4)                              # output
    cost = pl.CostEstimate(flops=flops, transcendentals=N,
                           bytes_accessed=bytes_accessed)

    out = pl.pallas_call(
        relation_kernel,
        out_shape=jax.ShapeDtypeStruct((N, C_OUT), jnp.float32),
        grid_spec=pltpu.PrefetchScalarGridSpec(
            num_scalar_prefetch=0,
            grid=grid,
            in_specs=[
                pl.BlockSpec((bm, C_IN), lambda i: (i, 0)),     # x tile (f32)
                pl.BlockSpec((C_IN, C_HID1), full),             # fused conv1x1+BN weight^T (bf16)
                pl.BlockSpec((1, C_HID1), full),                # fused conv+BN bias
                pl.BlockSpec((C_HID1, C_HID2), full),           # fc1 weight^T (bf16)
                pl.BlockSpec((1, C_HID2), full),                # fc1 bias
                pl.BlockSpec((1, C_HID2), full),                # fc2 weight row
                pl.BlockSpec((1, 1), full),                     # fc2 bias
            ],
            out_specs=pl.BlockSpec((bm, C_OUT), lambda i: (i, 0)),
        ),
        compiler_params=pltpu.CompilerParams(
            dimension_semantics=("parallel",)),
        cost_estimate=cost,
    )(x, w1_t, b1_f, w2_t, b2_r, w3_r, b3_r)

    return out                                   # already (N, 1); no slice pass


def init_params(key):
    ks = jax.random.split(key, 8)
    w1 = jax.random.normal(ks[0], (C_HID1, C_IN, 1, 1), jnp.float32) * 0.02
    b1 = jax.random.normal(ks[1], (C_HID1,), jnp.float32) * 0.01
    bn_gamma = 1.0 + 0.1 * jax.random.normal(ks[2], (C_HID1,), jnp.float32)
    bn_beta = 0.1 * jax.random.normal(ks[3], (C_HID1,), jnp.float32)
    bn_mean = jnp.zeros((C_HID1,), jnp.float32)     # default running stats
    bn_var = jnp.ones((C_HID1,), jnp.float32)
    w2 = jax.random.normal(ks[4], (C_HID2, C_HID1), jnp.float32) * 0.02
    b2 = jax.random.normal(ks[5], (C_HID2,), jnp.float32) * 0.01
    w3 = jax.random.normal(ks[6], (C_OUT, C_HID2), jnp.float32) * 0.02
    b3 = jax.random.normal(ks[7], (C_OUT,), jnp.float32) * 0.01
    return (w1, b1, bn_gamma, bn_beta, bn_mean, bn_var, w2, b2, w3, b3)


def reference_forward(x_nchw, params):
    (w1, b1, g, bta, mu, var, w2, b2, w3, b3) = params
    x = x_nchw.reshape(x_nchw.shape[0], C_IN)
    h = x @ w1.reshape(C_HID1, C_IN).T + b1
    h = (h - mu) / jnp.sqrt(var + BN_EPS) * g + bta
    h = jnp.maximum(h, 0.0)
    h = jnp.maximum(h @ w2.T + b2, 0.0)
    return jax.nn.sigmoid(h @ w3.T + b3)


if __name__ == "__main__":
    key = jax.random.PRNGKey(0)
    kx, kp = jax.random.split(key)
    N = 8
    x = jax.random.normal(kx, (N, C_IN, 1, 1), jnp.float32)  # (2*num_fea_4, 1, 1)
    params = init_params(kp)

    # Hoisted one-time weight prep (folding / transpose / bf16 cast).
    folded = jax.block_until_ready(fold_params(params))

    out = relation_network_forward(x, folded)
    out = jax.block_until_ready(out)

    ref = reference_forward(x, params)
    assert out.shape == (N, 1)
    # Tolerance accounts for bf16 matmul operands (f32 accumulation); sigmoid
    # output is in [0, 1] so an absolute check is appropriate.
    assert jnp.allclose(out, ref, atol=2e-3, rtol=0), (
        f"max abs diff {float(jnp.max(jnp.abs(out - ref)))}")
    print("KERNEL_OK")
</pallas_src>

<mosaic_0001>
module attributes {stable_mosaic.version = 11 : i64} {
  func.func @relation_kernel(%arg0: i32, %arg1: memref<8x512xf32, #tpu.memory_space<vmem>>, %arg2: memref<512x512xbf16, #tpu.memory_space<vmem>>, %arg3: memref<1x512xf32, #tpu.memory_space<vmem>>, %arg4: memref<512x128xbf16, #tpu.memory_space<vmem>>, %arg5: memref<1x128xf32, #tpu.memory_space<vmem>>, %arg6: memref<1x128xf32, #tpu.memory_space<vmem>>, %arg7: memref<1x1xf32, #tpu.memory_space<vmem>>, %arg8: memref<8x1xf32, #tpu.memory_space<vmem>>) attributes {dimension_semantics = [#tpu.dimension_semantics<parallel>], iteration_bounds = array<i64: 1>, scalar_prefetch = 0 : i64, scratch_operands = 0 : i64, tpu.core_type = #tpu.core_type<tc>, window_params = [{transform_indices = @transform_0, window_bounds = array<i64: 8, 512>}, {pipeline_mode = #tpu.pipeline_mode<synchronous>, transform_indices = @transform_1, window_bounds = array<i64: 512, 512>}, {pipeline_mode = #tpu.pipeline_mode<synchronous>, transform_indices = @transform_2, window_bounds = array<i64: 1, 512>}, {pipeline_mode = #tpu.pipeline_mode<synchronous>, transform_indices = @transform_3, window_bounds = array<i64: 512, 128>}, {pipeline_mode = #tpu.pipeline_mode<synchronous>, transform_indices = @transform_4, window_bounds = array<i64: 1, 128>}, {pipeline_mode = #tpu.pipeline_mode<synchronous>, transform_indices = @transform_5, window_bounds = array<i64: 1, 128>}, {pipeline_mode = #tpu.pipeline_mode<synchronous>, transform_indices = @transform_6, window_bounds = array<i64: 1, 1>}, {transform_indices = @transform_7, window_bounds = array<i64: 8, 1>}]} {
    %c0 = arith.constant 0 : index
    %c0_0 = arith.constant 0 : index
    %0 = vector.load %arg1[%c0, %c0_0] : memref<8x512xf32, #tpu.memory_space<vmem>>, vector<8x512xf32>
    %1 = arith.truncf %0 : vector<8x512xf32> to vector<8x512xbf16>
    %c0_1 = arith.constant 0 : index
    %c0_2 = arith.constant 0 : index
    %2 = vector.load %arg2[%c0_1, %c0_2] : memref<512x512xbf16, #tpu.memory_space<vmem>>, vector<512x512xbf16>
    %cst = arith.constant dense<0.000000e+00> : vector<8x512xf32>
    %3 = tpu.matmul %1, %2, %cst {dimension_numbers = #tpu.dot_dimension_numbers<[1], [0], [0], [1], [0, 0, 1, 1], [], []>} : vector<8x512xbf16>, vector<512x512xbf16>, vector<8x512xf32> -> vector<8x512xf32>
    %c0_3 = arith.constant 0 : index
    %c0_4 = arith.constant 0 : index
    %4 = vector.load %arg3[%c0_3, %c0_4] : memref<1x512xf32, #tpu.memory_space<vmem>>, vector<1x512xf32>
    %5 = vector.broadcast %4 : vector<1x512xf32> to vector<8x512xf32>
    %6 = arith.addf %3, %5 : vector<8x512xf32>
    %cst_5 = arith.constant 0.000000e+00 : f32
    %7 = vector.broadcast %cst_5 : f32 to vector<8x512xf32>
    %8 = arith.maximumf %6, %7 : vector<8x512xf32>
    %9 = arith.truncf %8 : vector<8x512xf32> to vector<8x512xbf16>
    %c0_6 = arith.constant 0 : index
    %c0_7 = arith.constant 0 : index
    %10 = vector.load %arg4[%c0_6, %c0_7] : memref<512x128xbf16, #tpu.memory_space<vmem>>, vector<512x128xbf16>
    %cst_8 = arith.constant dense<0.000000e+00> : vector<8x128xf32>
    %11 = tpu.matmul %9, %10, %cst_8 {dimension_numbers = #tpu.dot_dimension_numbers<[1], [0], [0], [1], [0, 0, 1, 1], [], []>} : vector<8x512xbf16>, vector<512x128xbf16>, vector<8x128xf32> -> vector<8x128xf32>
    %c0_9 = arith.constant 0 : index
    %c0_10 = arith.constant 0 : index
    %12 = vector.load %arg5[%c0_9, %c0_10] : memref<1x128xf32, #tpu.memory_space<vmem>>, vector<1x128xf32>
    %13 = vector.broadcast %12 : vector<1x128xf32> to vector<8x128xf32>
    %14 = arith.addf %11, %13 : vector<8x128xf32>
    %cst_11 = arith.constant 0.000000e+00 : f32
    %15 = vector.broadcast %cst_11 : f32 to vector<8x128xf32>
    %16 = arith.maximumf %14, %15 : vector<8x128xf32>
    %c0_12 = arith.constant 0 : index
    %c0_13 = arith.constant 0 : index
    %17 = vector.load %arg6[%c0_12, %c0_13] : memref<1x128xf32, #tpu.memory_space<vmem>>, vector<1x128xf32>
    %18 = vector.broadcast %17 : vector<1x128xf32> to vector<8x128xf32>
    %19 = arith.mulf %16, %18 : vector<8x128xf32>
    %cst_14 = arith.constant dense<0.000000e+00> : vector<8xf32>
    %20 = vector.multi_reduction <add>, %19, %cst_14 [1] : vector<8x128xf32> to vector<8xf32>
    %21 = vector.shape_cast %20 : vector<8xf32> to vector<8x1xf32>
    %c0_15 = arith.constant 0 : index
    %c0_16 = arith.constant 0 : index
    %22 = vector.load %arg7[%c0_15, %c0_16] : memref<1x1xf32, #tpu.memory_space<vmem>>, vector<1x1xf32>
    %23 = vector.broadcast %22 : vector<1x1xf32> to vector<8x1xf32>
    %24 = arith.addf %21, %23 : vector<8x1xf32>
    %25 = arith.negf %24 : vector<8x1xf32>
    %26 = math.exp %25 : vector<8x1xf32>
    %cst_17 = arith.constant 1.000000e+00 : f32
    %27 = vector.broadcast %cst_17 : f32 to vector<8x1xf32>
    %28 = arith.addf %27, %26 : vector<8x1xf32>
    %29 = arith.divf %27, %28 : vector<8x1xf32>
    %c0_18 = arith.constant 0 : index
    %c0_19 = arith.constant 0 : index
    %30 = vector.load %arg8[%c0_18, %c0_19] : memref<8x1xf32, #tpu.memory_space<vmem>>, vector<8x1xf32>
    tpu.vector_store %arg8[%c0_18, %c0_19], %29 {strides = array<i32>} : memref<8x1xf32, #tpu.memory_space<vmem>>, vector<8x1xf32>,
    return
  }
  func.func @transform_0(%arg0: i32) -> (i32, i32) {
    %c0_i32 = arith.constant 0 : i32
    %c0_i32_0 = arith.constant 0 : i32
    return %arg0, %c0_i32 : i32, i32
  }
  func.func @transform_1(%arg0: i32) -> (i32, i32) {
    %c0_i32 = arith.constant 0 : i32
    %c0_i32_0 = arith.constant 0 : i32
    %c0_i32_1 = arith.constant 0 : i32
    return %c0_i32, %c0_i32_0 : i32, i32
  }
  func.func @transform_2(%arg0: i32) -> (i32, i32) {
    %c0_i32 = arith.constant 0 : i32
    %c0_i32_0 = arith.constant 0 : i32
    %c0_i32_1 = arith.constant 0 : i32
    return %c0_i32, %c0_i32_0 : i32, i32
  }
  func.func @transform_3(%arg0: i32) -> (i32, i32) {
    %c0_i32 = arith.constant 0 : i32
    %c0_i32_0 = arith.constant 0 : i32
    %c0_i32_1 = arith.constant 0 : i32
    return %c0_i32, %c0_i32_0 : i32, i32
  }
  func.func @transform_4(%arg0: i32) -> (i32, i32) {
    %c0_i32 = arith.constant 0 : i32
    %c0_i32_0 = arith.constant 0 : i32
    %c0_i32_1 = arith.constant 0 : i32
    return %c0_i32, %c0_i32_0 : i32, i32
  }
  func.func @transform_5(%arg0: i32) -> (i32, i32) {
    %c0_i32 = arith.constant 0 : i32
    %c0_i32_0 = arith.constant 0 : i32
    %c0_i32_1 = arith.constant 0 : i32
    return %c0_i32, %c0_i32_0 : i32, i32
  }
  func.func @transform_6(%arg0: i32) -> (i32, i32) {
    %c0_i32 = arith.constant 0 : i32
    %c0_i32_0 = arith.constant 0 : i32
    %c0_i32_1 = arith.constant 0 : i32
    return %c0_i32, %c0_i32_0 : i32, i32
  }
  func.func @transform_7(%arg0: i32) -> (i32, i32) {
    %c0_i32 = arith.constant 0 : i32
    %c0_i32_0 = arith.constant 0 : i32
    return %arg0, %c0_i32 : i32, i32
  }
}

</mosaic_0001>

<bundles_post_ra>
// kernel: tpu_custom_call.1
= control target key start
LH: loop header
LB: loop body
LE: loop exit
PB: predicated region body
PF: predicated region fallthrough
CT: control target
= control target key end

     0   :  { %s2037_s0 = inlined_call_operand.hbm [shape: f32[8,512], index: 0, kind: input, shape index: {}]   ;;  %s2038_s1 = inlined_call_operand.hbm [shape: bf16[512,512], index: 1, kind: input, shape index: {}]   ;;  %s2039_s2 = inlined_call_operand.vmem [shape: f32[1,512], index: 2, kind: input, shape index: {}]   ;;  %s2040_s3 = inlined_call_operand.hbm [shape: bf16[512,128], index: 3, kind: input, shape index: {}]   ;;  %s2041_s4 = inlined_call_operand.vmem [shape: f32[1,128], index: 4, kind: input, shape index: {}]   ;;  %s2042_s5 = inlined_call_operand.vmem [shape: f32[1,128], index: 5, kind: input, shape index: {}]   ;;  %s2043_s6 = inlined_call_operand.<no memory space> [shape: f32[1,1], index: 6, kind: input, shape index: {}]   ;;  %s2044_s7 = inlined_call_operand.vmem [shape: f32[8,1], index: 7, kind: output, shape index: {}]  }
   0x1   :  { %v12_v0 = vstv %s2043_s6 }
   0x2   :  { %13 = vst [vmem:[#allocation2] sm:$0x1] %v12_v0 }
   0x3   :  { %14 = vsyncpa [#allocation4], 0 }
   0x4   :  { %15 = vsyncpa [#allocation6], 0  ;;  %s1939_s26 = smov [#allocation5]   ;;  %s1869_s30 = scalar_lea.hbm %s2038_s1, 16384 }
   0x5   :  { %s31_s27 = sshll.u32 %s1939_s26, 4  ;;  %p1870_p0 = scmp.ne.s32.totalorder %s2038_s1, %s1869_s30  ;;  %s32_s27 = int_to_ptr.vmem [resolvable:$true] %s31_s27 }
   0x6   :  { %p1873_p1 = scmp.lt.u32.totalorder %s1869_s30, %s2038_s1 }
   0x8   :  { %p1875_p2 = pnand %p1873_p1, %p1870_p0 }
   0xa   :  { %1878 = shalt.err (!%p1875_p2)
}
   0xb   :  { %s1879_s6 = scalar_lea.vmem %s32_s27, 16384  ;;  %p1884_p4 = scmp.lt.s32.totalorder %s32_s27, %s32_s27 }
   0xc   :  { %p1880_p3 = scmp.ne.s32.totalorder %s32_s27, %s1879_s6  ;;  %p1885_p5 = scmp.lt.s32.totalorder %s1879_s6, %s1879_s6 }
   0xe   :  { %p1886_p6 = por %p1885_p5, %p1884_p4 }
  0x10   :  { %p1887_p7 = pnand %p1886_p6, %p1880_p3 }
  0x12   :  { %1890 = shalt.err (!%p1887_p7)
}
  0x13   :  { %s1940_s12 = smov 256   ;;  %s1941_s13 = smov 16  }
  0x14   :  { %37 = dma.hbm_to_vmem [thread:$0]  %s2038_s1, 16384, %s32_s27, [#allocation6], %s1940_s12, %s1940_s12, %s1941_s13  }
  0x15   :  { %s1942_s16 = smov [#allocation3]   ;;  %s1943_s18 = smov [#allocation7]  }
  0x16   :  { %s22_s17 = sshll.u32 %s1942_s16, 4  ;;  %s45_s19 = sshll.u32 %s1943_s18, 4  ;;  %s23_s17 = int_to_ptr.vmem [resolvable:$true] %s22_s17  ;;  %s46_s19 = int_to_ptr.vmem [resolvable:$true] %s45_s19 }
  0x17   :  { %s1891_s22 = scalar_lea.hbm %s2037_s0, 512 }
  0x18   :  { %p1892_p8 = scmp.ne.s32.totalorder %s2037_s0, %s1891_s22  ;;  %p1895_p9 = scmp.lt.u32.totalorder %s1891_s22, %s2037_s0 }
  0x1a   :  { %p1897_p10 = pnand %p1895_p9, %p1892_p8 }
  0x1c   :  { %1900 = shalt.err (!%p1897_p10)
}
  0x1d   :  { %s1901_s1 = scalar_lea.vmem %s23_s17, 512  ;;  %p1906_p12 = scmp.lt.s32.totalorder %s23_s17, %s23_s17 }
  0x1e   :  { %p1902_p11 = scmp.ne.s32.totalorder %s23_s17, %s1901_s1  ;;  %p1907_p13 = scmp.lt.s32.totalorder %s1901_s1, %s1901_s1 }
  0x20   :  { %p1908_p0 = por %p1907_p13, %p1906_p12 }
  0x22   :  { %p1909_p1 = pnand %p1908_p0, %p1902_p11 }
  0x24   :  { %1912 = shalt.err (!%p1909_p1)
}
  0x25   :  { %25 = dma.hbm_to_vmem [thread:$0]  %s2037_s0, 512, %s23_s17, [#allocation4]  }
  0x26   :  { %s1913_s8 = scalar_lea.hbm %s2040_s3, 4096 }
  0x27   :  { %p1914_p2 = scmp.ne.s32.totalorder %s2040_s3, %s1913_s8  ;;  %p1917_p3 = scmp.lt.u32.totalorder %s1913_s8, %s2040_s3 }
  0x29   :  { %p1919_p4 = pnand %p1917_p3, %p1914_p2 }
  0x2b   :  { %1922 = shalt.err (!%p1919_p4)
}
  0x2c   :  { %s1923_s12 = scalar_lea.vmem %s46_s19, 4096  ;;  %p1928_p6 = scmp.lt.s32.totalorder %s46_s19, %s46_s19 }
  0x2d   :  { %p1924_p5 = scmp.ne.s32.totalorder %s46_s19, %s1923_s12  ;;  %p1929_p7 = scmp.lt.s32.totalorder %s1923_s12, %s1923_s12 }
  0x2f   :  { %p1930_p8 = por %p1929_p7, %p1928_p6 }
  0x31   :  { %p1931_p9 = pnand %p1930_p8, %p1924_p5 }
  0x33   :  { %1934 = shalt.err (!%p1931_p9)
}
  0x34   :  { %s1944_s0 = smov 64   ;;  %s1945_s13 = smov 4  }
  0x35   :  { %51 = dma.hbm_to_vmem [thread:$0]  %s2040_s3, 4096, %s46_s19, [#allocation6], %s1944_s0, %s1944_s0, %s1945_s13  }
  0x36   :  { %1935 = dma.done.wait [#allocation4], 512  }
  0x37   :  { %1936 = vsyncadd [#allocation4], 4294966784 }
  0x38   :  { %1937 = dma.done.wait [#allocation6], 20480  }
  0x39   :  { %1938 = vsyncadd [#allocation6], 4294946816  ;;  %v1641_v1 = vld [vmem:[#allocation5 + $0x4] ss:$16 sps:$4 sm:$0xff]   ;;  %v1643_v2 = vld [vmem:[#allocation5 + $0xc] ss:$16 sps:$4 sm:$0xff]  }
  0x3a   :  { %866 = vmatprep.subr.bf16.mxu0 %v1641_v1  ;;  %v1645_v3 = vld [vmem:[#allocation5] ss:$16 sps:$4 sm:$0xff]   ;;  %v1646_v4 = vld [vmem:[#allocation5 + $0x8] ss:$16 sps:$4 sm:$0xff]   ;;  %948 = vmatprep.subr.bf16.mxu1 %v1643_v2  ;;  %v1647_v5 = vld [vmem:[#allocation5 + $0x24] ss:$16 sps:$4 sm:$0xff]  }
  0x3b   :  { %867 = vmatpush1.bf16.msra.mxu0 %v1645_v3  ;;  %949 = vmatpush1.bf16.msra.mxu1 %v1646_v4  ;;  %v1649_v6 = vld [vmem:[#allocation5 + $0x2c] ss:$16 sps:$4 sm:$0xff]   ;;  %v1651_v7 = vld [vmem:[#allocation5 + $0x20] ss:$16 sps:$4 sm:$0xff]   ;;  %v1652_v8 = vld [vmem:[#allocation5 + $0x28] ss:$16 sps:$4 sm:$0xff]  }
  0x3c   :  { %868 = vmatprep.subr.bf16.mxu0 %v1647_v5  ;;  %950 = vmatprep.subr.bf16.mxu1 %v1649_v6  ;;  %v1653_v9 = vld [vmem:[#allocation5 + $0x44] ss:$16 sps:$4 sm:$0xff]   ;;  %v1655_v10 = vld [vmem:[#allocation5 + $0x4c] ss:$16 sps:$4 sm:$0xff]   ;;  %v1657_v11 = vld [vmem:[#allocation5 + $0x40] ss:$16 sps:$4 sm:$0xff]  }
  0x3d   :  { %v1658_v12 = vld [vmem:[#allocation5 + $0x48] ss:$16 sps:$4 sm:$0xff]   ;;  %v1659_v13 = vld [vmem:[#allocation5 + $0x64] ss:$16 sps:$4 sm:$0xff]   ;;  %v1661_v14 = vld [vmem:[#allocation5 + $0x6c] ss:$16 sps:$4 sm:$0xff]  }
  0x3e   :  { %v1663_v15 = vld [vmem:[#allocation5 + $0x60] ss:$16 sps:$4 sm:$0xff]   ;;  %v1664_v16 = vld [vmem:[#allocation5 + $0x68] ss:$16 sps:$4 sm:$0xff]   ;;  %v1665_v17 = vld [vmem:[#allocation5 + $0x84] ss:$16 sps:$4 sm:$0xff]  }
  0x3f   :  { %869 = vmatpush1.bf16.msra.mxu0 %v1651_v7  ;;  %951 = vmatpush1.bf16.msra.mxu1 %v1652_v8  ;;  %v1667_v18 = vld [vmem:[#allocation5 + $0x8c] ss:$16 sps:$4 sm:$0xff]   ;;  %v1669_v19 = vld [vmem:[#allocation5 + $0x80] ss:$16 sps:$4 sm:$0xff]   ;;  %v1670_v20 = vld [vmem:[#allocation5 + $0x88] ss:$16 sps:$4 sm:$0xff]  }
  0x40   :  { %870 = vmatprep.subr.bf16.mxu0 %v1653_v9  ;;  %952 = vmatprep.subr.bf16.mxu1 %v1655_v10  ;;  %v1671_v21 = vld [vmem:[#allocation5 + $0xa4] ss:$16 sps:$4 sm:$0xff]   ;;  %v1673_v22 = vld [vmem:[#allocation5 + $0xac] ss:$16 sps:$4 sm:$0xff]   ;;  %v1675_v23 = vld [vmem:[#allocation5 + $0xa0] ss:$16 sps:$4 sm:$0xff]  }
  0x41   :  { %v1676_v24 = vld [vmem:[#allocation5 + $0xa8] ss:$16 sps:$4 sm:$0xff]   ;;  %v1677_v25 = vld [vmem:[#allocation5 + $0xc4] ss:$16 sps:$4 sm:$0xff]   ;;  %v1679_v26 = vld [vmem:[#allocation5 + $0xcc] ss:$16 sps:$4 sm:$0xff]  }
  0x42   :  { %v1681_v27 = vld [vmem:[#allocation5 + $0xc0] ss:$16 sps:$4 sm:$0xff]   ;;  %v1682_v28 = vld [vmem:[#allocation5 + $0xc8] ss:$16 sps:$4 sm:$0xff]   ;;  %v1683_v29 = vld [vmem:[#allocation5 + $0xe4] ss:$16 sps:$4 sm:$0xff]  }
  0x43   :  { %871 = vmatpush1.bf16.msra.mxu0 %v1657_v11  ;;  %953 = vmatpush1.bf16.msra.mxu1 %v1658_v12  ;;  %v1685_v30 = vld [vmem:[#allocation5 + $0xec] ss:$16 sps:$4 sm:$0xff]   ;;  %v1687_v31 = vld [vmem:[#allocation5 + $0xe0] ss:$16 sps:$4 sm:$0xff]   ;;  %v1688_v32 = vld [vmem:[#allocation5 + $0xe8] ss:$16 sps:$4 sm:$0xff]  }
  0x44   :  { %872 = vmatprep.subr.bf16.mxu0 %v1659_v13  ;;  %954 = vmatprep.subr.bf16.mxu1 %v1661_v14  ;;  %v1689_v33 = vld [vmem:[#allocation5 + $0x104] ss:$16 sps:$4 sm:$0xff]   ;;  %v1691_v34 = vld [vmem:[#allocation5 + $0x10c] ss:$16 sps:$4 sm:$0xff]   ;;  %v1693_v35 = vld [vmem:[#allocation5 + $0x100] ss:$16 sps:$4 sm:$0xff]  }
  0x45   :  { %v1694_v36 = vld [vmem:[#allocation5 + $0x108] ss:$16 sps:$4 sm:$0xff]   ;;  %v1695_v37 = vld [vmem:[#allocation5 + $0x124] ss:$16 sps:$4 sm:$0xff]   ;;  %v1697_v38 = vld [vmem:[#allocation5 + $0x12c] ss:$16 sps:$4 sm:$0xff]  }
  0x46   :  { %v1699_v39 = vld [vmem:[#allocation5 + $0x120] ss:$16 sps:$4 sm:$0xff]   ;;  %v1700_v40 = vld [vmem:[#allocation5 + $0x128] ss:$16 sps:$4 sm:$0xff]   ;;  %v1701_v41 = vld [vmem:[#allocation5 + $0x144] ss:$16 sps:$4 sm:$0xff]  }
  0x47   :  { %873 = vmatpush1.bf16.msra.mxu0 %v1663_v15  ;;  %955 = vmatpush1.bf16.msra.mxu1 %v1664_v16  ;;  %v1703_v42 = vld [vmem:[#allocation5 + $0x14c] ss:$16 sps:$4 sm:$0xff]   ;;  %v1705_v43 = vld [vmem:[#allocation5 + $0x140] ss:$16 sps:$4 sm:$0xff]   ;;  %v1706_v44 = vld [vmem:[#allocation5 + $0x148] ss:$16 sps:$4 sm:$0xff]  }
  0x48   :  { %874 = vmatprep.subr.bf16.mxu0 %v1665_v17  ;;  %956 = vmatprep.subr.bf16.mxu1 %v1667_v18  ;;  %v1707_v45 = vld [vmem:[#allocation5 + $0x164] ss:$16 sps:$4 sm:$0xff]   ;;  %v1709_v46 = vld [vmem:[#allocation5 + $0x16c] ss:$16 sps:$4 sm:$0xff]   ;;  %v1711_v48 = vld [vmem:[#allocation5 + $0x160] ss:$16 sps:$4 sm:$0xff]  }
  0x49   :  { %v69_v47 = vld [vmem:[#allocation3 + $0x8] sm:$0xff]  ;;  %v1713_v51 = vld [vmem:[#allocation5 + $0x184] ss:$16 sps:$4 sm:$0xff]   ;;  %v1717_v53 = vld [vmem:[#allocation5 + $0x180] ss:$16 sps:$4 sm:$0xff]   ;;  %vm1406_vm0 = vcmask 7168  }
  0x4a   :  { %v73_v49 = vpack.c.bf16 %v69_v47, %v69_v47  ;;  %v1712_v50 = vld [vmem:[#allocation5 + $0x168] ss:$16 sps:$4 sm:$0xff]   ;;  %v1715_v52 = vld [vmem:[#allocation5 + $0x18c] ss:$16 sps:$4 sm:$0xff]   ;;  %v1719_v55 = vld [vmem:[#allocation5 + $0x1a4] ss:$16 sps:$4 sm:$0xff]  }
  0x4b   :  { %875 = vmatpush1.bf16.msra.mxu0 %v1669_v19  ;;  %957 = vmatpush1.bf16.msra.mxu1 %v1670_v20  ;;  %v1718_v54 = vld [vmem:[#allocation5 + $0x188] ss:$16 sps:$4 sm:$0xff]   ;;  %v1721_v56 = vld [vmem:[#allocation5 + $0x1ac] ss:$16 sps:$4 sm:$0xff]   ;;  %v1723_v57 = vld [vmem:[#allocation5 + $0x1a0] ss:$16 sps:$4 sm:$0xff]  }
  0x4c   :  { %876 = vmatprep.subr.bf16.mxu0 %v1671_v21  ;;  %958 = vmatprep.subr.bf16.mxu1 %v1673_v22  ;;  %v1724_v58 = vld [vmem:[#allocation5 + $0x1a8] ss:$16 sps:$4 sm:$0xff]   ;;  %v1725_v59 = vld [vmem:[#allocation5 + $0x1c4] ss:$16 sps:$4 sm:$0xff]   ;;  %v1727_v60 = vld [vmem:[#allocation5 + $0x1cc] ss:$16 sps:$4 sm:$0xff]  }
  0x4d   :  { %898 = vmatprep.mubr.bf16.mxu0 %v73_v49  ;;  %980 = vmatprep.mubr.bf16.mxu1 %v73_v49  ;;  %v1729_v61 = vld [vmem:[#allocation5 + $0x1c0] ss:$16 sps:$4 sm:$0xff]   ;;  %v1730_v62 = vld [vmem:[#allocation5 + $0x1c8] ss:$16 sps:$4 sm:$0xff]   ;;  %v1731_v63 = vld [vmem:[#allocation5 + $0x1e4] ss:$16 sps:$4 sm:$0xff]  }
  0x4e   :  { %v1733_v0 = vld [vmem:[#allocation5 + $0x1ec] ss:$16 sps:$4 sm:$0xff]   ;;  %v1735_v1 = vld [vmem:[#allocation5 + $0x1e0] ss:$16 sps:$4 sm:$0xff]   ;;  %v1736_v2 = vld [vmem:[#allocation5 + $0x1e8] ss:$16 sps:$4 sm:$0xff]  }
  0x4f   :  { %877 = vmatpush1.bf16.msra.mxu0 %v1675_v23  ;;  %959 = vmatpush1.bf16.msra.mxu1 %v1676_v24  ;;  %v68_v3 = vld [vmem:[#allocation3] sm:$0xff]  ;;  %v1742_v5 = vld [vmem:[#allocation5 + $0x20c] ss:$16 sps:$4 sm:$0xff]   ;;  %v1740_v8 = vld [vmem:[#allocation5 + $0x208] ss:$16 sps:$4 sm:$0xff]  }
  0x50   :  { %878 = vmatprep.subr.bf16.mxu0 %v1677_v25  ;;  %960 = vmatprep.subr.bf16.mxu1 %v1679_v26  ;;  %v1739_v4 = vld [vmem:[#allocation5 + $0x204] ss:$16 sps:$4 sm:$0xff]   ;;  %v72_v6 = vpack.c.bf16 %v68_v3, %v68_v3  ;;  %v1737_v7 = vld [vmem:[#allocation5 + $0x200] ss:$16 sps:$4 sm:$0xff]   ;;  %v1748_v10 = vld [vmem:[#allocation5 + $0x22c] ss:$16 sps:$4 sm:$0xff]  }
  0x51   :  { %v1745_v9 = vld [vmem:[#allocation5 + $0x224] ss:$16 sps:$4 sm:$0xff]   ;;  %v1743_v11 = vld [vmem:[#allocation5 + $0x220] ss:$16 sps:$4 sm:$0xff]   ;;  %v1746_v12 = vld [vmem:[#allocation5 + $0x228] ss:$16 sps:$4 sm:$0xff]  }
  0x52   :  { %v1751_v13 = vld [vmem:[#allocation5 + $0x244] ss:$16 sps:$4 sm:$0xff]   ;;  %v1754_v14 = vld [vmem:[#allocation5 + $0x24c] ss:$16 sps:$4 sm:$0xff]   ;;  %v1749_v15 = vld [vmem:[#allocation5 + $0x240] ss:$16 sps:$4 sm:$0xff]  }
  0x53   :  { %879 = vmatpush1.bf16.msra.mxu0 %v1681_v27  ;;  %961 = vmatpush1.bf16.msra.mxu1 %v1682_v28  ;;  %v1752_v16 = vld [vmem:[#allocation5 + $0x248] ss:$16 sps:$4 sm:$0xff]   ;;  %v1757_v17 = vld [vmem:[#allocation5 + $0x264] ss:$16 sps:$4 sm:$0xff]   ;;  %v1760_v18 = vld [vmem:[#allocation5 + $0x26c] ss:$16 sps:$4 sm:$0xff]  }
  0x54   :  { %880 = vmatprep.subr.bf16.mxu0 %v1683_v29  ;;  %962 = vmatprep.subr.bf16.mxu1 %v1685_v30  ;;  %v1755_v19 = vld [vmem:[#allocation5 + $0x260] ss:$16 sps:$4 sm:$0xff]   ;;  %v1758_v20 = vld [vmem:[#allocation5 + $0x268] ss:$16 sps:$4 sm:$0xff]   ;;  %v1763_v21 = vld [vmem:[#allocation5 + $0x284] ss:$16 sps:$4 sm:$0xff]  }
  0x55   :  { %v1766_v22 = vld [vmem:[#allocation5 + $0x28c] ss:$16 sps:$4 sm:$0xff]   ;;  %v1761_v23 = vld [vmem:[#allocation5 + $0x280] ss:$16 sps:$4 sm:$0xff]   ;;  %v1764_v24 = vld [vmem:[#allocation5 + $0x288] ss:$16 sps:$4 sm:$0xff]  }
  0x56   :  { %v1769_v25 = vld [vmem:[#allocation5 + $0x2a4] ss:$16 sps:$4 sm:$0xff]   ;;  %v1772_v26 = vld [vmem:[#allocation5 + $0x2ac] ss:$16 sps:$4 sm:$0xff]   ;;  %v1767_v27 = vld [vmem:[#allocation5 + $0x2a0] ss:$16 sps:$4 sm:$0xff]  }
  0x57   :  { %881 = vmatpush1.bf16.msra.mxu0 %v1687_v31  ;;  %963 = vmatpush1.bf16.msra.mxu1 %v1688_v32  ;;  %v1770_v28 = vld [vmem:[#allocation5 + $0x2a8] ss:$16 sps:$4 sm:$0xff]   ;;  %v1775_v29 = vld [vmem:[#allocation5 + $0x2c4] ss:$16 sps:$4 sm:$0xff]   ;;  %v1778_v30 = vld [vmem:[#allocation5 + $0x2cc] ss:$16 sps:$4 sm:$0xff]  }
  0x58   :  { %882 = vmatprep.subr.bf16.mxu0 %v1689_v33  ;;  %964 = vmatprep.subr.bf16.mxu1 %v1691_v34  ;;  %v1773_v31 = vld [vmem:[#allocation5 + $0x2c0] ss:$16 sps:$4 sm:$0xff]   ;;  %v71_v32 = vld [vmem:[#allocation3 + $0x18] sm:$0xff]  ;;  %v1799_v47 = vld [vmem:[#allocation5 + $0x344] ss:$16 sps:$4 sm:$0xff]  }
  0x59   :  { %v1776_v33 = vld [vmem:[#allocation5 + $0x2c8] ss:$16 sps:$4 sm:$0xff]   ;;  %v75_v34 = vpack.c.bf16 %v71_v32, %v71_v32  ;;  %v1797_v49 = vld [vmem:[#allocation5 + $0x340] ss:$16 sps:$4 sm:$0xff]   ;;  %v1829_v3 = vld [vmem:[#allocation5 + $0x3e4] ss:$16 sps:$4 sm:$0xff]  }
  0x5a   :  { %v1856_v32 = vld [vmem:[#allocation7 + $0xa8] sm:$0xff]  }
  0x5b   :  { %883 = vmatpush1.bf16.msra.mxu0 %v1693_v35  ;;  %965 = vmatpush1.bf16.msra.mxu1 %v1694_v36  ;;  %v1781_v35 = vld [vmem:[#allocation5 + $0x2e4] ss:$16 sps:$4 sm:$0xff]   ;;  %v1784_v36 = vld [vmem:[#allocation5 + $0x2ec] ss:$16 sps:$4 sm:$0xff]  }
  0x5c   :  { %884 = vmatprep.subr.bf16.mxu0 %v1695_v37  ;;  %966 = vmatprep.subr.bf16.mxu1 %v1697_v38  ;;  %v1779_v37 = vld [vmem:[#allocation5 + $0x2e0] ss:$16 sps:$4 sm:$0xff]   ;;  %v1782_v38 = vld [vmem:[#allocation5 + $0x2e8] ss:$16 sps:$4 sm:$0xff]  }
  0x5f   :  { %885 = vmatpush1.bf16.msra.mxu0 %v1699_v39  ;;  %967 = vmatpush1.bf16.msra.mxu1 %v1700_v40  ;;  %v1787_v39 = vld [vmem:[#allocation5 + $0x304] ss:$16 sps:$4 sm:$0xff]   ;;  %v1790_v40 = vld [vmem:[#allocation5 + $0x30c] ss:$16 sps:$4 sm:$0xff]  }
  0x60   :  { %886 = vmatprep.subr.bf16.mxu0 %v1701_v41  ;;  %968 = vmatprep.subr.bf16.mxu1 %v1703_v42  ;;  %v1785_v41 = vld [vmem:[#allocation5 + $0x300] ss:$16 sps:$4 sm:$0xff]   ;;  %v1788_v42 = vld [vmem:[#allocation5 + $0x308] ss:$16 sps:$4 sm:$0xff]  }
  0x63   :  { %887 = vmatpush1.bf16.msra.mxu0 %v1705_v43  ;;  %969 = vmatpush1.bf16.msra.mxu1 %v1706_v44  ;;  %v1793_v43 = vld [vmem:[#allocation5 + $0x324] ss:$16 sps:$4 sm:$0xff]   ;;  %v1796_v44 = vld [vmem:[#allocation5 + $0x32c] ss:$16 sps:$4 sm:$0xff]  }
  0x64   :  { %888 = vmatprep.subr.bf16.mxu0 %v1707_v45  ;;  %970 = vmatprep.subr.bf16.mxu1 %v1709_v46  ;;  %v1791_v45 = vld [vmem:[#allocation5 + $0x320] ss:$16 sps:$4 sm:$0xff]   ;;  %v1794_v46 = vld [vmem:[#allocation5 + $0x328] ss:$16 sps:$4 sm:$0xff]  }
  0x67   :  { %889 = vmatpush1.bf16.msra.mxu0 %v1711_v48  ;;  %971 = vmatpush1.bf16.msra.mxu1 %v1712_v50  ;;  %v1802_v48 = vld [vmem:[#allocation5 + $0x34c] ss:$16 sps:$4 sm:$0xff]   ;;  %v1800_v50 = vld [vmem:[#allocation5 + $0x348] ss:$16 sps:$4 sm:$0xff]  }
  0x68   :  { %890 = vmatprep.subr.bf16.mxu0 %v1713_v51  ;;  %972 = vmatprep.subr.bf16.mxu1 %v1715_v52  ;;  %v1805_v51 = vld [vmem:[#allocation5 + $0x364] ss:$16 sps:$4 sm:$0xff]   ;;  %v1808_v52 = vld [vmem:[#allocation5 + $0x36c] ss:$16 sps:$4 sm:$0xff]  }
  0x6b   :  { %891 = vmatpush1.bf16.msra.mxu0 %v1717_v53  ;;  %973 = vmatpush1.bf16.msra.mxu1 %v1718_v54  ;;  %v1803_v53 = vld [vmem:[#allocation5 + $0x360] ss:$16 sps:$4 sm:$0xff]   ;;  %v1806_v54 = vld [vmem:[#allocation5 + $0x368] ss:$16 sps:$4 sm:$0xff]  }
  0x6c   :  { %892 = vmatprep.subr.bf16.mxu0 %v1719_v55  ;;  %974 = vmatprep.subr.bf16.mxu1 %v1721_v56  ;;  %v1811_v55 = vld [vmem:[#allocation5 + $0x384] ss:$16 sps:$4 sm:$0xff]   ;;  %v1814_v56 = vld [vmem:[#allocation5 + $0x38c] ss:$16 sps:$4 sm:$0xff]  }
  0x6f   :  { %893 = vmatpush1.bf16.msra.mxu0 %v1723_v57  ;;  %975 = vmatpush1.bf16.msra.mxu1 %v1724_v58  ;;  %v1809_v57 = vld [vmem:[#allocation5 + $0x380] ss:$16 sps:$4 sm:$0xff]   ;;  %v1812_v58 = vld [vmem:[#allocation5 + $0x388] ss:$16 sps:$4 sm:$0xff]  }
  0x70   :  { %894 = vmatprep.subr.bf16.mxu0 %v1725_v59  ;;  %976 = vmatprep.subr.bf16.mxu1 %v1727_v60  ;;  %v1817_v59 = vld [vmem:[#allocation5 + $0x3a4] ss:$16 sps:$4 sm:$0xff]   ;;  %v1820_v60 = vld [vmem:[#allocation5 + $0x3ac] ss:$16 sps:$4 sm:$0xff]  }
  0x73   :  { %895 = vmatpush1.bf16.msra.mxu0 %v1729_v61  ;;  %977 = vmatpush1.bf16.msra.mxu1 %v1730_v62  ;;  %v1815_v61 = vld [vmem:[#allocation5 + $0x3a0] ss:$16 sps:$4 sm:$0xff]   ;;  %v1818_v62 = vld [vmem:[#allocation5 + $0x3a8] ss:$16 sps:$4 sm:$0xff]  }
  0x74   :  { %896 = vmatprep.subr.bf16.mxu0 %v1731_v63  ;;  %978 = vmatprep.subr.bf16.mxu1 %v1733_v0  ;;  %v1823_v63 = vld [vmem:[#allocation5 + $0x3c4] ss:$16 sps:$4 sm:$0xff]   ;;  %v1826_v0 = vld [vmem:[#allocation5 + $0x3cc] ss:$16 sps:$4 sm:$0xff]  }
  0x77   :  { %897 = vmatpush1.bf16.msra.mxu0 %v1735_v1  ;;  %979 = vmatpush1.bf16.msra.mxu1 %v1736_v2  ;;  %v1821_v1 = vld [vmem:[#allocation5 + $0x3c0] ss:$16 sps:$4 sm:$0xff]   ;;  %v1824_v2 = vld [vmem:[#allocation5 + $0x3c8] ss:$16 sps:$4 sm:$0xff]  }
  0x78   :  { %907 = vmatprep.subr.bf16.mxu0 %v1739_v4  ;;  %989 = vmatprep.subr.bf16.mxu1 %v1742_v5  ;;  %v1832_v4 = vld [vmem:[#allocation5 + $0x3ec] ss:$16 sps:$4 sm:$0xff]   ;;  %v1827_v5 = vld [vmem:[#allocation5 + $0x3e0] ss:$16 sps:$4 sm:$0xff]  }
  0x7a   :  { %899 = vmatmul.mubr.bf16.vlgmr.msra.gmra.mrb[0].mxu0 %v72_v6  ;;  %981 = vmatmul.mubr.bf16.vlgmr.msra.gmra.mrb[0].mxu1 %v72_v6  ;;  %v1830_v6 = vld [vmem:[#allocation5 + $0x3e8] ss:$16 sps:$4 sm:$0xff]  }
  0x7b   :  { %908 = vmatpush1.bf16.msra.mxu0 %v1737_v7  ;;  %990 = vmatpush1.bf16.msra.mxu1 %v1740_v8  ;;  %v70_v7 = vld [vmem:[#allocation3 + $0x10] sm:$0xff]  ;;  %v1833_v8 = vld [vmem:[#allocation7 + $0x40] sm:$0xff]  }
  0x7c   :  { %909 = vmatprep.subr.bf16.mxu0 %v1745_v9  ;;  %991 = vmatprep.subr.bf16.mxu1 %v1748_v10  ;;  %v1834_v9 = vld [vmem:[#allocation7 + $0xc0] sm:$0xff]   ;;  %v74_v10 = vpack.c.bf16 %v70_v7, %v70_v7 }
  0x7d   :  { %939 = vmatprep.mubr.bf16.mxu0 %v75_v34  ;;  %1021 = vmatprep.mubr.bf16.mxu1 %v75_v34  ;;  %v1858_v34 = vld [vmem:[#allocation7 + $0xf0] sm:$0xff]  }
  0x7f   :  { %910 = vmatpush1.bf16.msra.mxu0 %v1743_v11  ;;  %992 = vmatpush1.bf16.msra.mxu1 %v1746_v12  ;;  %v1835_v11 = vld [vmem:[#allocation7] sm:$0xff]  }
  0x80   :  { %911 = vmatprep.subr.bf16.mxu0 %v1751_v13  ;;  %993 = vmatprep.subr.bf16.mxu1 %v1754_v14  ;;  %v1836_v12 = vld [vmem:[#allocation7 + $0x80] sm:$0xff]   ;;  %v1837_v13 = vld [vmem:[#allocation7 + $0x48] sm:$0xff]  }
  0x81   :  { %v1838_v14 = vld [vmem:[#allocation7 + $0xc8] sm:$0xff]  }
  0x83   :  { %912 = vmatpush1.bf16.msra.mxu0 %v1749_v15  ;;  %994 = vmatpush1.bf16.msra.mxu1 %v1752_v16  ;;  %v1839_v15 = vld [vmem:[#allocation7 + $0x8] sm:$0xff]  }
  0x84   :  { %913 = vmatprep.subr.bf16.mxu0 %v1757_v17  ;;  %995 = vmatprep.subr.bf16.mxu1 %v1760_v18  ;;  %v1840_v16 = vld [vmem:[#allocation7 + $0x88] sm:$0xff]   ;;  %v1841_v17 = vld [vmem:[#allocation7 + $0x50] sm:$0xff]  }
  0x85   :  { %v1842_v18 = vld [vmem:[#allocation7 + $0xd0] sm:$0xff]  }
  0x87   :  { %914 = vmatpush1.bf16.msra.mxu0 %v1755_v19  ;;  %996 = vmatpush1.bf16.msra.mxu1 %v1758_v20  ;;  %v1843_v19 = vld [vmem:[#allocation7 + $0x10] sm:$0xff]  }
  0x88   :  { %915 = vmatprep.subr.bf16.mxu0 %v1763_v21  ;;  %997 = vmatprep.subr.bf16.mxu1 %v1766_v22  ;;  %v1844_v20 = vld [vmem:[#allocation7 + $0x90] sm:$0xff]   ;;  %v1845_v21 = vld [vmem:[#allocation7 + $0x58] sm:$0xff]  }
  0x89   :  { %v1846_v22 = vld [vmem:[#allocation7 + $0xd8] sm:$0xff]  }
  0x8b   :  { %916 = vmatpush1.bf16.msra.mxu0 %v1761_v23  ;;  %998 = vmatpush1.bf16.msra.mxu1 %v1764_v24  ;;  %v1847_v23 = vld [vmem:[#allocation7 + $0x18] sm:$0xff]  }
  0x8c   :  { %917 = vmatprep.subr.bf16.mxu0 %v1769_v25  ;;  %999 = vmatprep.subr.bf16.mxu1 %v1772_v26  ;;  %v1848_v24 = vld [vmem:[#allocation7 + $0x98] sm:$0xff]   ;;  %v1849_v25 = vld [vmem:[#allocation7 + $0x60] sm:$0xff]  }
  0x8d   :  { %v1850_v26 = vld [vmem:[#allocation7 + $0xe0] sm:$0xff]  }
  0x8f   :  { %918 = vmatpush1.bf16.msra.mxu0 %v1767_v27  ;;  %1000 = vmatpush1.bf16.msra.mxu1 %v1770_v28  ;;  %v1851_v27 = vld [vmem:[#allocation7 + $0x20] sm:$0xff]  }
  0x90   :  { %919 = vmatprep.subr.bf16.mxu0 %v1775_v29  ;;  %1001 = vmatprep.subr.bf16.mxu1 %v1778_v30  ;;  %v1852_v28 = vld [vmem:[#allocation7 + $0xa0] sm:$0xff]   ;;  %v1853_v29 = vld [vmem:[#allocation7 + $0x68] sm:$0xff]  }
  0x91   :  { %v1854_v30 = vld [vmem:[#allocation7 + $0xe8] sm:$0xff]  }
  0x93   :  { %920 = vmatpush1.bf16.msra.mxu0 %v1773_v31  ;;  %1002 = vmatpush1.bf16.msra.mxu1 %v1776_v33  ;;  %v1855_v31 = vld [vmem:[#allocation7 + $0x28] sm:$0xff]   ;;  %v1857_v33 = vld [vmem:[#allocation7 + $0x70] sm:$0xff]  }
  0x94   :  { %921 = vmatprep.subr.bf16.mxu0 %v1781_v35  ;;  %1003 = vmatprep.subr.bf16.mxu1 %v1784_v36  ;;  %v1859_v35 = vld [vmem:[#allocation7 + $0x30] sm:$0xff]  }
  0x95   :  { %v1860_v36 = vld [vmem:[#allocation7 + $0xb0] sm:$0xff]  }
  0x97   :  { %922 = vmatpush1.bf16.msra.mxu0 %v1779_v37  ;;  %1004 = vmatpush1.bf16.msra.mxu1 %v1782_v38  ;;  %v1861_v37 = vld [vmem:[#allocation7 + $0x78] sm:$0xff]  }
  0x98   :  { %923 = vmatprep.subr.bf16.mxu0 %v1787_v39  ;;  %1005 = vmatprep.subr.bf16.mxu1 %v1790_v40  ;;  %v1862_v38 = vld [vmem:[#allocation7 + $0xf8] sm:$0xff]  }
  0x99   :  { %v1863_v39 = vld [vmem:[#allocation7 + $0x38] sm:$0xff]  }
  0x9a   :  { %v1864_v40 = vld [vmem:[#allocation7 + $0xb8] sm:$0xff]  }
  0x9b   :  { %924 = vmatpush1.bf16.msra.mxu0 %v1785_v41  ;;  %1006 = vmatpush1.bf16.msra.mxu1 %v1788_v42  ;;  %v206_v41 = vlaneseq }
  0x9c   :  { %925 = vmatprep.subr.bf16.mxu0 %v1793_v43  ;;  %1007 = vmatprep.subr.bf16.mxu1 %v1796_v44 }
  0x9d   :  { %v207_v42 = vshrl.u32 %v206_v41, 7 }
  0x9f   :  { %926 = vmatpush1.bf16.msra.mxu0 %v1791_v45  ;;  %1008 = vmatpush1.bf16.msra.mxu1 %v1794_v46  ;;  %v208_v43 = vsub.s32 0, %v207_v42  ;;  %v216_v44 = vsub.s32 2, %v207_v42  ;;  %v204_v45 = vld [vmem:[%s2039_s2] sm:$0xf]  ;;  %v212_v46 = vsub.s32 1, %v207_v42 }
  0xa0   :  { %927 = vmatprep.subr.bf16.mxu0 %v1799_v47  ;;  %1009 = vmatprep.subr.bf16.mxu1 %v1802_v48  ;;  %v220_v47 = vsub.s32 3, %v207_v42 }
  0xa1   :  { %v209_v48 = vrot.slane %v204_v45, %v208_v43 }
  0xa3   :  { %928 = vmatpush1.bf16.msra.mxu0 %v1797_v49  ;;  %1010 = vmatpush1.bf16.msra.mxu1 %v1800_v50  ;;  %v217_v49 = vrot.slane %v204_v45, %v216_v44  ;;  %v213_v50 = vrot.slane %v204_v45, %v212_v46 }
  0xa4   :  { %929 = vmatprep.subr.bf16.mxu0 %v1805_v51  ;;  %1011 = vmatprep.subr.bf16.mxu1 %v1808_v52  ;;  %v221_v51 = vrot.slane %v204_v45, %v220_v47 }
  0xa7   :  { %930 = vmatpush1.bf16.msra.mxu0 %v1803_v53  ;;  %1012 = vmatpush1.bf16.msra.mxu1 %v1806_v54 }
  0xa8   :  { %931 = vmatprep.subr.bf16.mxu0 %v1811_v55  ;;  %1013 = vmatprep.subr.bf16.mxu1 %v1814_v56 }
  0xab   :  { %932 = vmatpush1.bf16.msra.mxu0 %v1809_v57  ;;  %1014 = vmatpush1.bf16.msra.mxu1 %v1812_v58 }
  0xac   :  { %933 = vmatprep.subr.bf16.mxu0 %v1817_v59  ;;  %1015 = vmatprep.subr.bf16.mxu1 %v1820_v60 }
  0xaf   :  { %934 = vmatpush1.bf16.msra.mxu0 %v1815_v61  ;;  %1016 = vmatpush1.bf16.msra.mxu1 %v1818_v62 }
  0xb0   :  { %935 = vmatprep.subr.bf16.mxu0 %v1823_v63  ;;  %1017 = vmatprep.subr.bf16.mxu1 %v1826_v0 }
  0xb3   :  { %936 = vmatpush1.bf16.msra.mxu0 %v1821_v1  ;;  %1018 = vmatpush1.bf16.msra.mxu1 %v1824_v2 }
  0xb4   :  { %937 = vmatprep.subr.bf16.mxu0 %v1829_v3  ;;  %1019 = vmatprep.subr.bf16.mxu1 %v1832_v4 }
  0xb7   :  { %938 = vmatpush1.bf16.msra.mxu0 %v1827_v5  ;;  %1020 = vmatpush1.bf16.msra.mxu1 %v1830_v6 }
  0xb8   :  { %1578 = vmatprep.subr.bf16.mxu0 %v1833_v8  ;;  %1600 = vmatprep.subr.bf16.mxu1 %v1834_v9 }
  0xba   :  { %940 = vmatmul.mubr.bf16.vlgmr.msra.gmra.mrb[0].mxu0 %v74_v10  ;;  %1022 = vmatmul.mubr.bf16.vlgmr.msra.gmra.mrb[0].mxu1 %v74_v10  ;;  %v1542_v10 = vld [vmem:[%s2041_s4] ss:$0 sm:$0xff] }
  0xbb   :  { %1579 = vmatpush3.bf16.msra.mxu0 %v1835_v11  ;;  %1601 = vmatpush3.bf16.msra.mxu1 %v1836_v12 }
  0xbc   :  { %1580 = vmatprep.subr.bf16.mxu0 %v1837_v13  ;;  %1602 = vmatprep.subr.bf16.mxu1 %v1838_v14 }
  0xbf   :  { %1581 = vmatpush3.bf16.msra.mxu0 %v1839_v15  ;;  %1603 = vmatpush3.bf16.msra.mxu1 %v1840_v16 }
  0xc0   :  { %1582 = vmatprep.subr.bf16.mxu0 %v1841_v17  ;;  %1604 = vmatprep.subr.bf16.mxu1 %v1842_v18 }
  0xc3   :  { %1583 = vmatpush3.bf16.msra.mxu0 %v1843_v19  ;;  %1605 = vmatpush3.bf16.msra.mxu1 %v1844_v20 }
  0xc4   :  { %1584 = vmatprep.subr.bf16.mxu0 %v1845_v21  ;;  %1606 = vmatprep.subr.bf16.mxu1 %v1846_v22  ;;  %v1575_v21 = vld [vmem:[%s2042_s5] ss:$0 sm:$0xff] }
  0xc7   :  { %1585 = vmatpush3.bf16.msra.mxu0 %v1847_v23  ;;  %1607 = vmatpush3.bf16.msra.mxu1 %v1848_v24  ;;  %v1576_v24 = vld [vmem:[#allocation2] ss:$0 sm:$0xff] }
  0xc8   :  { %1586 = vmatprep.subr.bf16.mxu0 %v1849_v25  ;;  %1608 = vmatprep.subr.bf16.mxu1 %v1850_v26 }
  0xcb   :  { %1587 = vmatpush3.bf16.msra.mxu0 %v1851_v27  ;;  %1609 = vmatpush3.bf16.msra.mxu1 %v1852_v28 }
  0xcc   :  { %1588 = vmatprep.subr.bf16.mxu0 %v1853_v29  ;;  %1610 = vmatprep.subr.bf16.mxu1 %v1854_v30 }
  0xcf   :  { %1589 = vmatpush3.bf16.msra.mxu0 %v1855_v31  ;;  %1611 = vmatpush3.bf16.msra.mxu1 %v1856_v32 }
  0xd0   :  { %1590 = vmatprep.subr.bf16.mxu0 %v1857_v33  ;;  %1612 = vmatprep.subr.bf16.mxu1 %v1858_v34 }
  0xd3   :  { %1591 = vmatpush3.bf16.msra.mxu0 %v1859_v35  ;;  %1613 = vmatpush3.bf16.msra.mxu1 %v1860_v36 }
  0xd4   :  { %1592 = vmatprep.subr.bf16.mxu0 %v1861_v37  ;;  %1614 = vmatprep.subr.bf16.mxu1 %v1862_v38 }
  0xd7   :  { %1593 = vmatpush3.bf16.msra.mxu0 %v1863_v39  ;;  %1615 = vmatpush3.bf16.msra.mxu1 %v1864_v40 }
 0x18d   :  { %v941_v52 = vpop.f32.mrb[0].mxu0  ;;  %v1023_v53 = vpop.f32.mrb[0].mxu1 }
 0x18e   :  { %v1622_v54 = vadd.f32 %v941_v52, %v209_v48  ;;  %v1624_v55 = vadd.f32 %v1023_v53, %v217_v49  ;;  %v943_v56 = vpop.f32.mrb[1].mxu0  ;;  %v1025_v57 = vpop.f32.mrb[1].mxu1 }
 0x18f   :  { %v1623_v58 = vadd.f32 %v943_v56, %v213_v50  ;;  %v1625_v59 = vadd.f32 %v1025_v57, %v221_v51  ;;  %v945_v60 = vpop.f32.mrb[2].mxu0  ;;  %v1027_v61 = vpop.f32.mrb[2].mxu1 }
 0x190   :  { %v1030_v62 = vmax.f32 %v1622_v54, 0.0  ;;  %v1032_v63 = vmax.f32 %v1624_v55, 0.0  ;;  %v946_v0 = vpop.f32.mrb[3].mxu0  ;;  %v1028_v1 = vpop.f32.mrb[3].mxu1 }
 0x191   :  { %v1031_v2 = vmax.f32 %v1623_v58, 0.0  ;;  %v1033_v3 = vmax.f32 %v1625_v59, 0.0 }
 0x192   :  { %v1034_v6 = vpack.c.bf16 %v1030_v62, %v1030_v62  ;;  %v1036_v7 = vpack.c.bf16 %v1032_v63, %v1032_v63 }
 0x193   :  { %v1035_v4 = vpack.c.bf16 %v1031_v2, %v1031_v2  ;;  %v1037_v5 = vpack.c.bf16 %v1033_v3, %v1033_v3 }
 0x195   :  { %1333 = vmatprep.mubr.bf16.mxu0 %v1035_v4  ;;  %1373 = vmatprep.mubr.bf16.mxu1 %v1037_v5 }
 0x196   :  { %1334 = vmatmul.mubr.bf16.vlgmr.msra.gmra.mrb[4].mxu0 %v1034_v6  ;;  %1374 = vmatmul.mubr.bf16.vlgmr.msra.gmra.mrb[4].mxu1 %v1036_v7 }
 0x269   :  { %v1594_v8 = vpop.f32.mrb[4].mxu0  ;;  %v1616_v9 = vpop.f32.mrb[4].mxu1 }
 0x26a   :  { %v1595_v11 = vpop.f32.mrb[5].mxu0  ;;  %v1617_v12 = vpop.f32.mrb[5].mxu1 }
 0x26b   :  { %v1596_v13 = vadd.f32 %v1595_v11, %v1594_v8  ;;  %v1618_v14 = vadd.f32 %v1617_v12, %v1616_v9  ;;  %v1597_v15 = vpop.f32.mrb[6].mxu0  ;;  %v1619_v16 = vpop.f32.mrb[6].mxu1 }
 0x26c   :  { %v1598_v17 = vpop.f32.mrb[7].mxu0  ;;  %v1620_v18 = vpop.f32.mrb[7].mxu1 }
 0x26d   :  { %v1336_v19 = vadd.f32 %v1596_v13, %v1542_v10 }
 0x26f   :  { %v1376_v20 = vadd.f32 %v1618_v14, %v1336_v19 }
 0x271   :  { %v1381_v22 = vmax.f32 %v1376_v20, 0.0 }
 0x273   :  { %v1389_v23 = vmul.f32 %v1575_v21, %v1381_v22 }
 0x275   :  { %1390 = vadd.xlane.f32.xlu0 %v1389_v23 }
 0x302   :  { %v1391_v25 = vpop.xlane.xlu0 %1390 }
 0x303   :  { %v1399_v26 = vadd.f32 %v1576_v24, %v1391_v25 }
 0x305   :  { %v1577_v27 = vmul.f32 -1.442695, %v1399_v26 }
 0x307   :  { %1865 = vpow2.f32 %v1577_v27 }
 0x311   :  { %v1866_v28 = vpop.eup %1865 }
 0x312   :  { %v1403_v29 = vadd.f32 1.0, %v1866_v28 }
 0x314   :  { %1867 = vrcp.f32 %v1403_v29 }
 0x31e   :  { %v1868_v30 = vpop.eup %1867 }
 0x31f   :  { %1407 = vst.msk [vmem:[%s2044_s7] sm:$0xff] %vm1406_vm0, %v1868_v30 }
 0x320   :  { %1412 = vsyncpa [#allocation4], 1 }
 0x321   :  { %1413 = vsyncpa [#allocation6], 1 }

</bundles_post_ra>
